<compile_context>
chip_gen: v5e
topology: v5e:2x2
jax: 0.10.0
libtpu: 0.0.40
codegen_flags: <defaults>
</compile_context>

<pallas_src>
import jax
import jax.numpy as jnp
from jax.experimental import pallas as pl
from jax.experimental.pallas import tpu as pltpu

LANE = 128      # lane width; keep 128 on all generations
ROW_TILE = 16   # bf16 packs 16 rows per sublane group


def _round_up(n, m):
    return ((n + m - 1) // m) * m


def _cdiv(a, b):
    return -(-a // b)


def _policy_kernel(x_ref, w1_ref, b1_ref, w2_ref, b2_ref, w3_ref, b3_ref, o_ref):
    """One (TB, 128)-wide batch tile: 3 matmuls (bf16 in, f32 acc) + ReLU + softmax.

    Padded logit lanes already carry -1e30 from the padded b3, so no mask is needed.
    """
    x = x_ref[...]

    h1 = jnp.dot(x, w1_ref[...], preferred_element_type=jnp.float32) + b1_ref[...]
    h1 = jnp.maximum(h1, 0.0)

    h2 = jnp.dot(h1.astype(jnp.bfloat16), w2_ref[...],
                 preferred_element_type=jnp.float32) + b2_ref[...]
    h2 = jnp.maximum(h2, 0.0)

    logits = jnp.dot(h2.astype(jnp.bfloat16), w3_ref[...],
                     preferred_element_type=jnp.float32) + b3_ref[...]

    # Numerically stable softmax; reciprocal goes to the EUP slot.
    m = jnp.max(logits, axis=-1, keepdims=True)
    e = jnp.exp(logits - m)
    s = jnp.sum(e, axis=-1, keepdims=True)
    inv = pl.reciprocal(s, approx=True)
    o_ref[...] = (e * inv).astype(o_ref.dtype)


def prepare_params(params):
    """One-time weight preparation (hoisted out of the per-call path).

    Weights are stored (in, out) — PyTorch Linear transposed — padded to 128-lane
    multiples and cast to bf16. Biases stay f32; b3's padded lanes are -1e30 so the
    kernel needs no explicit padded-lane mask before the softmax.
    """
    w1, b1 = params["w1"], params["b1"]
    w2, b2 = params["w2"], params["b2"]
    w3, b3 = params["w3"], params["b3"]

    in_size, hid = w1.shape
    out_size = w3.shape[1]
    p_in = _round_up(in_size, LANE)
    p_h = _round_up(hid, LANE)
    p_out = _round_up(out_size, LANE)

    def pad2(a, r, c, fill=0.0):
        return jnp.pad(a, ((0, r - a.shape[0]), (0, c - a.shape[1])),
                       constant_values=fill)

    return {
        "w1": pad2(w1, p_in, p_h).astype(jnp.bfloat16),
        "b1": pad2(b1, 1, p_h).astype(jnp.float32),
        "w2": pad2(w2, p_h, p_h).astype(jnp.bfloat16),
        "b2": pad2(b2, 1, p_h).astype(jnp.float32),
        "w3": pad2(w3, p_h, p_out).astype(jnp.bfloat16),
        # -1e30 in padded logit lanes -> exp underflows to 0 inside the softmax.
        "b3": pad2(b3.astype(jnp.float32), 1, p_out, fill=-1e30),
        "dims": (in_size, hid, out_size, p_in, p_h, p_out),
    }


def _choose_batch_tiling(batch):
    """Batch tile (multiple of 16, <=1024) and padded batch; >=2 grid blocks when possible."""
    pb = _round_up(batch, ROW_TILE)
    if pb <= 2 * ROW_TILE:
        return pb, pb                                    # too small to split usefully
    tb = min(1024, _round_up(_cdiv(pb, 2), ROW_TILE))    # >=2 blocks for v7x megacore
    n_blocks = _cdiv(pb, tb)
    return tb, n_blocks * tb


def simple_policy_network(x, prepared, *, out_dtype=jnp.float32):
    """Forward pass. x: (batch, input_size) f32. Returns (batch, output_size) softmax probs."""
    in_size, hid, out_size, p_in, p_h, p_out = prepared["dims"]
    batch = x.shape[0]
    assert x.shape[1] == in_size

    tb, p_batch = _choose_batch_tiling(batch)
    n_blocks = p_batch // tb

    # Cast first (halves the pad-copy), then pad feature dim to the lane width and the
    # batch dim only by what the tiling requires.
    xp = jnp.pad(x.astype(jnp.bfloat16),
                 ((0, p_batch - batch), (0, p_in - in_size)))

    w1p, b1p = prepared["w1"], prepared["b1"]
    w2p, b2p = prepared["w2"], prepared["b2"]
    w3p, b3p = prepared["w3"], prepared["b3"]

    # VMEM budget: weights resident (constant block index), x/out streamed (double-buffered).
    weight_bytes = (w1p.size + w2p.size + w3p.size) * 2
    bias_bytes = (b1p.size + b2p.size + b3p.size) * 4
    out_itemsize = jnp.dtype(out_dtype).itemsize
    stream_bytes = 2 * tb * p_in * 2 + 2 * tb * p_out * out_itemsize
    # Single-buffer the resident weights only when double-buffering them would strain
    # v7x's 64 MiB physical VMEM (large hidden sizes); default path unchanged otherwise.
    single_buffer_weights = 2 * weight_bytes > (24 << 20)
    weight_kwargs = {"pipeline_mode": pl.Buffered(1)} if single_buffer_weights else {}
    resident_bytes = weight_bytes * (1 if single_buffer_weights else 2) + 2 * bias_bytes
    vmem_limit = int(min(max(resident_bytes + stream_bytes + (4 << 20), 16 << 20), 64 << 20))

    flops = 2 * p_batch * (p_in * p_h + p_h * p_h + p_h * p_out)
    bytes_accessed = (xp.size * 2 + weight_bytes + bias_bytes
                      + p_batch * p_out * out_itemsize)
    cost = pl.CostEstimate(flops=flops, transcendentals=p_batch * p_out,
                           bytes_accessed=bytes_accessed)

    out_padded = pl.pallas_call(
        _policy_kernel,
        out_shape=jax.ShapeDtypeStruct((p_batch, p_out), out_dtype),
        grid_spec=pltpu.PrefetchScalarGridSpec(
            num_scalar_prefetch=0,
            grid=(n_blocks,),
            in_specs=[
                pl.BlockSpec((tb, p_in), lambda i: (i, 0)),                     # x: streamed
                pl.BlockSpec((p_in, p_h), lambda i: (0, 0), **weight_kwargs),   # w1: resident
                pl.BlockSpec((1, p_h), lambda i: (0, 0)),                       # b1: resident
                pl.BlockSpec((p_h, p_h), lambda i: (0, 0), **weight_kwargs),    # w2: resident
                pl.BlockSpec((1, p_h), lambda i: (0, 0)),                       # b2: resident
                pl.BlockSpec((p_h, p_out), lambda i: (0, 0), **weight_kwargs),  # w3: resident
                pl.BlockSpec((1, p_out), lambda i: (0, 0)),                     # b3: resident
            ],
            out_specs=pl.BlockSpec((tb, p_out), lambda i: (i, 0)),
        ),
        compiler_params=pltpu.CompilerParams(
            dimension_semantics=("parallel",),
            vmem_limit_bytes=vmem_limit),
        cost_estimate=cost,
    )(xp, w1p, b1p, w2p, b2p, w3p, b3p)

    # Strip batch padding and padded output lanes to match the module's output shape.
    return out_padded[:batch, :out_size]


def init_params(key, input_size, hidden_size, output_size):
    """Deterministic init matching PyTorch Linear shapes (weights stored as (in, out))."""
    ks = jax.random.split(key, 6)

    def lin(kw, kb, fan_in, fan_out):
        bound = 1.0 / jnp.sqrt(fan_in)
        w = jax.random.uniform(kw, (fan_in, fan_out), jnp.float32, -bound, bound)
        b = jax.random.uniform(kb, (1, fan_out), jnp.float32, -bound, bound)
        return w, b

    w1, b1 = lin(ks[0], ks[1], input_size, hidden_size)
    w2, b2 = lin(ks[2], ks[3], hidden_size, hidden_size)
    w3, b3 = lin(ks[4], ks[5], hidden_size, output_size)
    return {"w1": w1, "b1": b1, "w2": w2, "b2": b2, "w3": w3, "b3": b3}


def _reference(x, p):
    h1 = jax.nn.relu(x @ p["w1"] + p["b1"])
    h2 = jax.nn.relu(h1 @ p["w2"] + p["b2"])
    logits = h2 @ p["w3"] + p["b3"]
    return jax.nn.softmax(logits, axis=-1)


if __name__ == "__main__":
    key = jax.random.PRNGKey(0)
    k_x, k_p = jax.random.split(key)

    batch, input_size, hidden_size, output_size = 8, 16, 32, 8
    x = jax.random.normal(k_x, (batch, input_size), jnp.float32)
    params = init_params(k_p, input_size, hidden_size, output_size)

    prepared = prepare_params(params)          # one-time weight prep (pad + bf16 cast)
    out = simple_policy_network(x, prepared)
    out = jax.block_until_ready(out)

    ref = _reference(x, params)  # f32 reference; kernel uses bf16 matmul operands
    assert out.shape == (batch, output_size)
    assert jnp.allclose(out, ref, atol=2e-2, rtol=5e-2)
    assert jnp.allclose(jnp.sum(out, axis=-1), 1.0, atol=1e-2)

    print("KERNEL_OK")
</pallas_src>

<mosaic_0001>
module attributes {stable_mosaic.version = 11 : i64} {
  func.func @_policy_kernel(%arg0: i32, %arg1: memref<16x128xbf16, #tpu.memory_space<vmem>>, %arg2: memref<128x128xbf16, #tpu.memory_space<vmem>>, %arg3: memref<1x128xf32, #tpu.memory_space<vmem>>, %arg4: memref<128x128xbf16, #tpu.memory_space<vmem>>, %arg5: memref<1x128xf32, #tpu.memory_space<vmem>>, %arg6: memref<128x128xbf16, #tpu.memory_space<vmem>>, %arg7: memref<1x128xf32, #tpu.memory_space<vmem>>, %arg8: memref<16x128xf32, #tpu.memory_space<vmem>>) attributes {dimension_semantics = [#tpu.dimension_semantics<parallel>], iteration_bounds = array<i64: 1>, scalar_prefetch = 0 : i64, scratch_operands = 0 : i64, tpu.core_type = #tpu.core_type<tc>, window_params = [{transform_indices = @transform_0, window_bounds = array<i64: 16, 128>}, {pipeline_mode = #tpu.pipeline_mode<synchronous>, transform_indices = @transform_1, window_bounds = array<i64: 128, 128>}, {pipeline_mode = #tpu.pipeline_mode<synchronous>, transform_indices = @transform_2, window_bounds = array<i64: 1, 128>}, {pipeline_mode = #tpu.pipeline_mode<synchronous>, transform_indices = @transform_3, window_bounds = array<i64: 128, 128>}, {pipeline_mode = #tpu.pipeline_mode<synchronous>, transform_indices = @transform_4, window_bounds = array<i64: 1, 128>}, {pipeline_mode = #tpu.pipeline_mode<synchronous>, transform_indices = @transform_5, window_bounds = array<i64: 128, 128>}, {pipeline_mode = #tpu.pipeline_mode<synchronous>, transform_indices = @transform_6, window_bounds = array<i64: 1, 128>}, {transform_indices = @transform_7, window_bounds = array<i64: 16, 128>}]} {
    %c0 = arith.constant 0 : index
    %c0_0 = arith.constant 0 : index
    %0 = vector.load %arg1[%c0, %c0_0] : memref<16x128xbf16, #tpu.memory_space<vmem>>, vector<16x128xbf16>
    %c0_1 = arith.constant 0 : index
    %c0_2 = arith.constant 0 : index
    %1 = vector.load %arg2[%c0_1, %c0_2] : memref<128x128xbf16, #tpu.memory_space<vmem>>, vector<128x128xbf16>
    %cst = arith.constant dense<0.000000e+00> : vector<16x128xf32>
    %2 = tpu.matmul %0, %1, %cst {dimension_numbers = #tpu.dot_dimension_numbers<[1], [0], [0], [1], [0, 0, 1, 1], [], []>} : vector<16x128xbf16>, vector<128x128xbf16>, vector<16x128xf32> -> vector<16x128xf32>
    %c0_3 = arith.constant 0 : index
    %c0_4 = arith.constant 0 : index
    %3 = vector.load %arg3[%c0_3, %c0_4] : memref<1x128xf32, #tpu.memory_space<vmem>>, vector<1x128xf32>
    %4 = vector.broadcast %3 : vector<1x128xf32> to vector<16x128xf32>
    %5 = arith.addf %2, %4 : vector<16x128xf32>
    %cst_5 = arith.constant 0.000000e+00 : f32
    %6 = vector.broadcast %cst_5 : f32 to vector<16x128xf32>
    %7 = arith.maximumf %5, %6 : vector<16x128xf32>
    %8 = arith.truncf %7 : vector<16x128xf32> to vector<16x128xbf16>
    %c0_6 = arith.constant 0 : index
    %c0_7 = arith.constant 0 : index
    %9 = vector.load %arg4[%c0_6, %c0_7] : memref<128x128xbf16, #tpu.memory_space<vmem>>, vector<128x128xbf16>
    %cst_8 = arith.constant dense<0.000000e+00> : vector<16x128xf32>
    %10 = tpu.matmul %8, %9, %cst_8 {dimension_numbers = #tpu.dot_dimension_numbers<[1], [0], [0], [1], [0, 0, 1, 1], [], []>} : vector<16x128xbf16>, vector<128x128xbf16>, vector<16x128xf32> -> vector<16x128xf32>
    %c0_9 = arith.constant 0 : index
    %c0_10 = arith.constant 0 : index
    %11 = vector.load %arg5[%c0_9, %c0_10] : memref<1x128xf32, #tpu.memory_space<vmem>>, vector<1x128xf32>
    %12 = vector.broadcast %11 : vector<1x128xf32> to vector<16x128xf32>
    %13 = arith.addf %10, %12 : vector<16x128xf32>
    %cst_11 = arith.constant 0.000000e+00 : f32
    %14 = vector.broadcast %cst_11 : f32 to vector<16x128xf32>
    %15 = arith.maximumf %13, %14 : vector<16x128xf32>
    %16 = arith.truncf %15 : vector<16x128xf32> to vector<16x128xbf16>
    %c0_12 = arith.constant 0 : index
    %c0_13 = arith.constant 0 : index
    %17 = vector.load %arg6[%c0_12, %c0_13] : memref<128x128xbf16, #tpu.memory_space<vmem>>, vector<128x128xbf16>
    %cst_14 = arith.constant dense<0.000000e+00> : vector<16x128xf32>
    %18 = tpu.matmul %16, %17, %cst_14 {dimension_numbers = #tpu.dot_dimension_numbers<[1], [0], [0], [1], [0, 0, 1, 1], [], []>} : vector<16x128xbf16>, vector<128x128xbf16>, vector<16x128xf32> -> vector<16x128xf32>
    %c0_15 = arith.constant 0 : index
    %c0_16 = arith.constant 0 : index
    %19 = vector.load %arg7[%c0_15, %c0_16] : memref<1x128xf32, #tpu.memory_space<vmem>>, vector<1x128xf32>
    %20 = vector.broadcast %19 : vector<1x128xf32> to vector<16x128xf32>
    %21 = arith.addf %18, %20 : vector<16x128xf32>
    %cst_17 = arith.constant dense<0xFF800000> : vector<16xf32>
    %22 = vector.multi_reduction <maximumf>, %21, %cst_17 [1] : vector<16x128xf32> to vector<16xf32>
    %23 = vector.shape_cast %22 : vector<16xf32> to vector<16x1xf32>
    %24 = vector.broadcast %23 : vector<16x1xf32> to vector<16x128xf32>
    %25 = arith.subf %21, %24 : vector<16x128xf32>
    %26 = math.exp %25 : vector<16x128xf32>
    %cst_18 = arith.constant dense<0.000000e+00> : vector<16xf32>
    %27 = vector.multi_reduction <add>, %26, %cst_18 [1] : vector<16x128xf32> to vector<16xf32>
    %28 = vector.shape_cast %27 : vector<16xf32> to vector<16x1xf32>
    %29 = tpu.reciprocal %28 {approx = true} : vector<16x1xf32> -> vector<16x1xf32>
    %30 = vector.broadcast %29 : vector<16x1xf32> to vector<16x128xf32>
    %31 = arith.mulf %26, %30 : vector<16x128xf32>
    %c0_19 = arith.constant 0 : index
    %c0_20 = arith.constant 0 : index
    %32 = vector.load %arg8[%c0_19, %c0_20] : memref<16x128xf32, #tpu.memory_space<vmem>>, vector<16x128xf32>
    tpu.vector_store %arg8[%c0_19, %c0_20], %31 {strides = array<i32>} : memref<16x128xf32, #tpu.memory_space<vmem>>, vector<16x128xf32>,
    return
  }
  func.func @transform_0(%arg0: i32) -> (i32, i32) {
    %c0_i32 = arith.constant 0 : i32
    %c0_i32_0 = arith.constant 0 : i32
    return %arg0, %c0_i32 : i32, i32
  }
  func.func @transform_1(%arg0: i32) -> (i32, i32) {
    %c0_i32 = arith.constant 0 : i32
    %c0_i32_0 = arith.constant 0 : i32
    %c0_i32_1 = arith.constant 0 : i32
    return %c0_i32, %c0_i32_0 : i32, i32
  }
  func.func @transform_2(%arg0: i32) -> (i32, i32) {
    %c0_i32 = arith.constant 0 : i32
    %c0_i32_0 = arith.constant 0 : i32
    %c0_i32_1 = arith.constant 0 : i32
    return %c0_i32, %c0_i32_0 : i32, i32
  }
  func.func @transform_3(%arg0: i32) -> (i32, i32) {
    %c0_i32 = arith.constant 0 : i32
    %c0_i32_0 = arith.constant 0 : i32
    %c0_i32_1 = arith.constant 0 : i32
    return %c0_i32, %c0_i32_0 : i32, i32
  }
  func.func @transform_4(%arg0: i32) -> (i32, i32) {
    %c0_i32 = arith.constant 0 : i32
    %c0_i32_0 = arith.constant 0 : i32
    %c0_i32_1 = arith.constant 0 : i32
    return %c0_i32, %c0_i32_0 : i32, i32
  }
  func.func @transform_5(%arg0: i32) -> (i32, i32) {
    %c0_i32 = arith.constant 0 : i32
    %c0_i32_0 = arith.constant 0 : i32
    %c0_i32_1 = arith.constant 0 : i32
    return %c0_i32, %c0_i32_0 : i32, i32
  }
  func.func @transform_6(%arg0: i32) -> (i32, i32) {
    %c0_i32 = arith.constant 0 : i32
    %c0_i32_0 = arith.constant 0 : i32
    %c0_i32_1 = arith.constant 0 : i32
    return %c0_i32, %c0_i32_0 : i32, i32
  }
  func.func @transform_7(%arg0: i32) -> (i32, i32) {
    %c0_i32 = arith.constant 0 : i32
    %c0_i32_0 = arith.constant 0 : i32
    return %arg0, %c0_i32 : i32, i32
  }
}

</mosaic_0001>

<bundles_post_ra>
// kernel: tpu_custom_call.1
= control target key start
LH: loop header
LB: loop body
LE: loop exit
PB: predicated region body
PF: predicated region fallthrough
CT: control target
= control target key end

     0   :  { %12 = vsyncpa [#allocation3], 0  ;;  %s737_s0 = inlined_call_operand.hbm [shape: bf16[16,128], index: 0, kind: input, shape index: {}]   ;;  %s738_s1 = inlined_call_operand.hbm [shape: bf16[128,128], index: 1, kind: input, shape index: {}]   ;;  %s739_s2 = inlined_call_operand.vmem [shape: f32[1,128], index: 2, kind: input, shape index: {}]   ;;  %s740_s3 = inlined_call_operand.hbm [shape: bf16[128,128], index: 3, kind: input, shape index: {}]   ;;  %s741_s4 = inlined_call_operand.vmem [shape: f32[1,128], index: 4, kind: input, shape index: {}]   ;;  %s742_s5 = inlined_call_operand.hbm [shape: bf16[128,128], index: 5, kind: input, shape index: {}]   ;;  %s743_s6 = inlined_call_operand.vmem [shape: f32[1,128], index: 6, kind: input, shape index: {}]   ;;  %s744_s7 = inlined_call_operand.hbm [shape: f32[16,128], index: 7, kind: output, shape index: {}]  }
   0x1   :  { %13 = vsyncpa [#allocation6], 0 }
   0x2   :  { %14 = vsyncpa [#allocation9], 0 }
   0x3   :  { %15 = vsyncpa [#allocation4], 0  ;;  %s33_s26 = sshll.u32 %s738_s1, 4  ;;  %s664_s27 = smov [#allocation5]   ;;  %s34_s26 = int_to_ptr.hbm [resolvable:$true] %s33_s26 }
   0x4   :  { %s35_s28 = sshll.u32 %s664_s27, 4  ;;  %s20_s8 = sshll.u32 %s737_s0, 4  ;;  %s36_s28 = int_to_ptr.vmem [resolvable:$true] %s35_s28  ;;  %s21_s8 = int_to_ptr.hbm [resolvable:$true] %s20_s8 }
   0x5   :  { %s665_s9 = smov 64   ;;  %s666_s10 = smov 4  }
   0x6   :  { %41 = dma.hbm_to_vmem [thread:$0]  %s34_s26, 1024, %s36_s28, [#allocation6], %s665_s9, %s665_s9, %s666_s10  }
   0x7   :  { %s667_s11 = smov [#allocation2]   ;;  %s48_s15 = sshll.u32 %s740_s3, 4  ;;  %s49_s15 = int_to_ptr.hbm [resolvable:$true] %s48_s15 }
   0x8   :  { %s22_s12 = sshll.u32 %s667_s11, 4  ;;  %s63_s17 = sshll.u32 %s742_s5, 4  ;;  %s23_s12 = int_to_ptr.vmem [resolvable:$true] %s22_s12  ;;  %s64_s17 = int_to_ptr.hbm [resolvable:$true] %s63_s17 }
   0x9   :  { %28 = dma.hbm_to_vmem [thread:$0]  %s21_s8, 128, %s23_s12, [#allocation3], %s665_s9, %s665_s9, %s666_s10  }
   0xa   :  { %s668_s18 = smov [#allocation7]   ;;  %s669_s0 = smov [#allocation8]  }
   0xb   :  { %s50_s19 = sshll.u32 %s668_s18, 4  ;;  %s65_s20 = sshll.u32 %s669_s0, 4  ;;  %s51_s19 = int_to_ptr.vmem [resolvable:$true] %s50_s19  ;;  %s66_s20 = int_to_ptr.vmem [resolvable:$true] %s65_s20 }
   0xc   :  { %56 = dma.hbm_to_vmem [thread:$0]  %s49_s15, 1024, %s51_s19, [#allocation6], %s665_s9, %s665_s9, %s666_s10  }
   0xd   :  { %71 = dma.hbm_to_vmem [thread:$0]  %s64_s17, 1024, %s66_s20, [#allocation9], %s665_s9, %s665_s9, %s666_s10  }
   0xe   :  { %656 = dma.done.wait [#allocation3], 128  }
   0xf   :  { %657 = vsyncadd [#allocation3], 4294967168 }
  0x10   :  { %658 = dma.done.wait [#allocation6], 2048  }
  0x11   :  { %659 = vsyncadd [#allocation6], 4294965248 }
  0x12   :  { %660 = dma.done.wait [#allocation9], 1024  }
  0x13   :  { %661 = vsyncadd [#allocation9], 4294966272  ;;  %v499_v0 = vld [vmem:[#allocation5 + $0x38] sm:$0xff]  ;;  %v498_v1 = vld [vmem:[#allocation5 + $0x30] sm:$0xff]  ;;  %s376_s26 = sshll.u32 %s744_s7, 4  ;;  %s671_s27 = smov 128   ;;  %s377_s26 = int_to_ptr.hbm [resolvable:$true] %s376_s26 }
  0x14   :  { %166 = vmatpush.bf16.msra.mxu0 %v499_v0  ;;  %v507_v2 = vld [vmem:[#allocation7 + $0x38] sm:$0xff]  ;;  %v506_v3 = vld [vmem:[#allocation7 + $0x30] sm:$0xff]  ;;  %v497_v4 = vld [vmem:[#allocation5 + $0x28] sm:$0xff]  ;;  %s672_s28 = smov 8  }
  0x15   :  { %251 = vmatpush.bf16.msra.mxu1 %v507_v2  ;;  %v505_v5 = vld [vmem:[#allocation7 + $0x28] sm:$0xff]  ;;  %v496_v6 = vld [vmem:[#allocation5 + $0x20] sm:$0xff]  ;;  %v495_v8 = vld [vmem:[#allocation5 + $0x18] sm:$0xff] }
  0x16   :  { %v504_v7 = vld [vmem:[#allocation7 + $0x20] sm:$0xff]  ;;  %v494_v9 = vld [vmem:[#allocation5 + $0x10] sm:$0xff]  ;;  %v493_v10 = vld [vmem:[#allocation5 + $0x8] sm:$0xff] }
  0x17   :  { %v492_v11 = vld [vmem:[#allocation5] sm:$0xff]  ;;  %v491_v12 = vld [vmem:[#allocation2] sm:$0xff]  ;;  %v502_v14 = vld [vmem:[#allocation7 + $0x10] sm:$0xff] }
  0x18   :  { %167 = vmatpush.bf16.msra.mxu0 %v498_v1  ;;  %v503_v13 = vld [vmem:[#allocation7 + $0x18] sm:$0xff]  ;;  %v501_v15 = vld [vmem:[#allocation7 + $0x8] sm:$0xff]  ;;  %v500_v16 = vld [vmem:[#allocation7] sm:$0xff] }
  0x19   :  { %252 = vmatpush.bf16.msra.mxu1 %v506_v3  ;;  %v515_v17 = vld [vmem:[#allocation8 + $0x38] sm:$0xff]  ;;  %v514_v18 = vld [vmem:[#allocation8 + $0x30] sm:$0xff]  ;;  %v513_v19 = vld [vmem:[#allocation8 + $0x28] sm:$0xff] }
  0x1a   :  { %336 = vmatpush.bf16.msra.mxu2 %v515_v17  ;;  %v512_v20 = vld [vmem:[#allocation8 + $0x20] sm:$0xff]  ;;  %v525_v22 = vld [vmem:[%s739_s2] ss:$0 sm:$0xff]  ;;  %v510_v30 = vld [vmem:[#allocation8 + $0x10] sm:$0xff] }
  0x1b   :  { %v511_v29 = vld [vmem:[#allocation8 + $0x18] sm:$0xff]  ;;  %v509_v31 = vld [vmem:[#allocation8 + $0x8] sm:$0xff]  ;;  %v508_v32 = vld [vmem:[#allocation8] sm:$0xff] }
  0x1c   :  { %168 = vmatpush.bf16.msra.mxu0 %v497_v4  ;;  %v526_v34 = vld [vmem:[%s741_s4] ss:$0 sm:$0xff]  ;;  %s670_s4 = smov [#allocation10]  }
  0x1d   :  { %253 = vmatpush.bf16.msra.mxu1 %v505_v5  ;;  %v527_v41 = vld [vmem:[%s743_s6] ss:$0 sm:$0xff]  ;;  %s374_s6 = sshll.u32 %s670_s4, 4  ;;  %s375_s6 = int_to_ptr.vmem [resolvable:$true] %s374_s6 }
  0x1e   :  { %337 = vmatpush.bf16.msra.mxu2 %v514_v18 }
  0x20   :  { %169 = vmatpush.bf16.msra.mxu0 %v496_v6 }
  0x21   :  { %254 = vmatpush.bf16.msra.mxu1 %v504_v7 }
  0x22   :  { %338 = vmatpush.bf16.msra.mxu2 %v513_v19 }
  0x24   :  { %170 = vmatpush.bf16.msra.mxu0 %v495_v8 }
  0x25   :  { %255 = vmatpush.bf16.msra.mxu1 %v503_v13 }
  0x26   :  { %339 = vmatpush.bf16.msra.mxu2 %v512_v20 }
  0x28   :  { %171 = vmatpush.bf16.msra.mxu0 %v494_v9 }
  0x29   :  { %256 = vmatpush.bf16.msra.mxu1 %v502_v14 }
  0x2a   :  { %340 = vmatpush.bf16.msra.mxu2 %v511_v29 }
  0x2c   :  { %172 = vmatpush.bf16.msra.mxu0 %v493_v10 }
  0x2d   :  { %257 = vmatpush.bf16.msra.mxu1 %v501_v15 }
  0x2e   :  { %341 = vmatpush.bf16.msra.mxu2 %v510_v30 }
  0x30   :  { %173 = vmatpush.bf16.msra.mxu0 %v492_v11 }
  0x31   :  { %258 = vmatpush.bf16.msra.mxu1 %v500_v16 }
  0x32   :  { %342 = vmatpush.bf16.msra.mxu2 %v509_v31 }
  0x33   :  { %174 = vmatmul.bf16.vlgmr.msra.gmra.mxu0 %v491_v12 }
  0x36   :  { %343 = vmatpush.bf16.msra.mxu2 %v508_v32 }
  0xb0   :  { %v175_v21 = vpop.f32.mrf.mxu0 }
  0xb1   :  { %v176_v23 = vadd.f32 %v525_v22, %v175_v21 }
  0xb3   :  { %v180_v26 = vmax.f32 %v176_v23, 0.0 }
  0xb8   :  { %v177_v24 = vpop.f32.mrf.mxu0 }
  0xb9   :  { %v178_v25 = vadd.f32 %v525_v22, %v177_v24 }
  0xbb   :  { %v181_v27 = vmax.f32 %v178_v25, 0.0 }
  0xbd   :  { %v182_v28 = vpack.c.bf16 %v181_v27, %v180_v26 }
  0xbf   :  { %259 = vmatmul.bf16.vlgmr.msra.gmra.mxu1 %v182_v28 }
 0x13c   :  { %v260_v33 = vpop.f32.mrf.mxu1 }
 0x13d   :  { %v261_v35 = vadd.f32 %v526_v34, %v260_v33 }
 0x13f   :  { %v265_v38 = vmax.f32 %v261_v35, 0.0 }
 0x144   :  { %v262_v36 = vpop.f32.mrf.mxu1 }
 0x145   :  { %v263_v37 = vadd.f32 %v526_v34, %v262_v36 }
 0x147   :  { %v266_v39 = vmax.f32 %v263_v37, 0.0 }
 0x149   :  { %v267_v40 = vpack.c.bf16 %v266_v39, %v265_v38 }
 0x14b   :  { %344 = vmatmul.bf16.vlgmr.msra.gmra.mxu2 %v267_v40 }
 0x1ce   :  { %v345_v42 = vpop.f32.mrf.mxu2 }
 0x1cf   :  { %v346_v43 = vadd.f32 %v527_v41, %v345_v42 }
 0x1d1   :  { %350 = vmax.xlane.f32.xlu0 %v346_v43 }
 0x1d6   :  { %v347_v44 = vpop.f32.mrf.mxu2 }
 0x1d7   :  { %v348_v45 = vadd.f32 %v527_v41, %v347_v44 }
 0x1d9   :  { %352 = vmax.xlane.f32.xlu0 %v348_v45 }
 0x244   :  { %v351_v46 = vpop.xlane.xlu0 %350 }
 0x245   :  { %v354_v47 = vsub.f32 %v346_v43, %v351_v46 }
 0x247   :  { %v356_v48 = vmul.f32 1.442695, %v354_v47 }
 0x249   :  { %528 = vpow2.f32 %v356_v48 }
 0x24c   :  { %v353_v49 = vpop.xlane.xlu0 %352 }
 0x24d   :  { %v355_v50 = vsub.f32 %v348_v45, %v353_v49 }
 0x24f   :  { %v529_v51 = vpop.eup %528  ;;  %v358_v52 = vmul.f32 1.442695, %v355_v50 }
 0x250   :  { %360 = vadd.xlane.f32.xlu1 %v529_v51 }
 0x251   :  { %530 = vpow2.f32 %v358_v52 }
 0x257   :  { %v531_v53 = vpop.eup %530 }
 0x258   :  { %362 = vadd.xlane.f32.xlu1 %v531_v53 }
 0x2c3   :  { %v361_v54 = vpop.xlane.xlu1 %360 }
 0x2c4   :  { %532 = vrcp.f32 %v361_v54 }
 0x2ca   :  { %v533_v55 = vpop.eup %532 }
 0x2cb   :  { %v366_v56 = vmul.f32 %v533_v55, %v529_v51  ;;  %v363_v57 = vpop.xlane.xlu1 %362 }
 0x2cc   :  { %534 = vrcp.f32 %v363_v57 }
 0x2cd   :  { %368 = vst [vmem:[#allocation10] sm:$0xff] %v366_v56 }
 0x2d2   :  { %v535_v58 = vpop.eup %534 }
 0x2d3   :  { %v367_v59 = vmul.f32 %v535_v58, %v531_v53 }
 0x2d5   :  { %369 = vst [vmem:[#allocation10 + $0x8] sm:$0xff] %v367_v59 }
 0x2d6   :  { %382 = dma.vmem_to_hbm [thread:$0]  %s375_s6, 256, %s377_s26, [#allocation4], %s671_s27, %s671_s27, %s672_s28  }
 0x2d7   :  { %662 = dma.done.wait [#allocation4], 256  }
 0x2d8   :  { %663 = vsyncadd [#allocation4], 4294967040 }
 0x2d9   :  { %387 = vsyncpa [#allocation3], 1 }
 0x2da   :  { %388 = vsyncpa [#allocation6], 1 }
 0x2db   :  { %389 = vsyncpa [#allocation9], 1 }
 0x2dc   :  { %390 = vsyncpa [#allocation4], 1 }

</bundles_post_ra>
